<compile_context>
chip_gen: v5e
topology: v5e:2x2
jax: 0.10.0
libtpu: 0.0.40
codegen_flags: <defaults>
</compile_context>

<pallas_src>
import functools
import re

import jax
import jax.numpy as jnp
from jax.experimental import pallas as pl
from jax.experimental.pallas import tpu as pltpu


def _round_up(x: int, m: int) -> int:
    return ((x + m - 1) // m) * m


def _cdiv(a: int, b: int) -> int:
    return -(-a // b)


def _tpu_generation() -> int:
    """Best-effort TPU generation (5/6/7...); defaults to 6 if undetectable."""
    try:
        kind = jax.devices()[0].device_kind
    except Exception:
        return 6
    m = re.search(r"(\d+)", kind)
    return int(m.group(1)) if m else 6


def _balanced_tile(dim: int, cap: int, align: int, min_tiles: int = 1) -> int:
    """Largest (<= cap) aligned tile that splits `dim` into near-equal pieces."""
    cap = max(align, (cap // align) * align)
    num_tiles = max(min_tiles, _cdiv(dim, cap))
    tile = _round_up(_cdiv(dim, num_tiles), align)
    return min(tile, cap)


def _adaptive_margin_loss_kernel(row_term_ref, neg_ref, out_ref, *,
                                 tile_b, tile_n, true_b, true_n,
                                 mask_rows, mask_cols):
    """One (tile_b, tile_n) block of the loss; accumulates per-row partial sums.

    Grid = (B tiles [parallel], N tiles [arbitrary, innermost]).
    out_ref is a (tile_b, 1) accumulator resident in VMEM across the inner N loop.
    Ragged edge tiles are masked with iota compares (emitted only when needed).
    """
    j = pl.program_id(1)

    @pl.when(j == 0)
    def _init():
        out_ref[...] = jnp.zeros_like(out_ref)

    neg = neg_ref[...].astype(jnp.float32)            # (tile_b, tile_n) f32
    row_term = row_term_ref[...]                      # (tile_b, 1) f32; = margin - pos

    # x = -(pos - neg - adjusted_margin) = neg + (adjusted_margin - pos)
    x = neg + row_term                                # (tile_b, tile_n)

    # Numerically stable softplus: max(x, 0) + log1p(exp(-|x|))
    loss = jnp.maximum(x, 0.0) + jnp.log1p(jnp.exp(-jnp.abs(x)))

    # Mask ragged edges (garbage beyond the true B/N extent never reaches the sum).
    if mask_rows or mask_cols:
        i = pl.program_id(0)
        mask = None
        if mask_rows:
            row_ids = jax.lax.broadcasted_iota(jnp.int32, (tile_b, 1), 0) + i * tile_b
            mask = row_ids < true_b                   # (tile_b, 1)
        if mask_cols:
            col_ids = jax.lax.broadcasted_iota(jnp.int32, (1, tile_n), 1) + j * tile_n
            cmask = col_ids < true_n                  # (1, tile_n)
            mask = cmask if mask is None else jnp.logical_and(mask, cmask)
        loss = jnp.where(mask, loss, 0.0)

    out_ref[...] += jnp.sum(loss, axis=1, keepdims=True)


def adaptive_margin_loss(pos_scores, neg_scores, pos_item_popularity,
                         neg_item_popularity=None,          # unused (parity with PyTorch)
                         base_margin=0.5, popularity_factor=0.1,
                         reduction="mean",
                         tile_b_max=None, tile_n_max=None):
    """JAX/Pallas equivalent of AdaptiveMarginLoss.forward (reduction 'mean'/'sum')."""
    del neg_item_popularity  # unused by the reference module as well

    pos = jnp.asarray(pos_scores)
    neg = jnp.asarray(neg_scores)
    pop = jnp.asarray(pos_item_popularity)

    B = pos.shape[0]
    neg_2d = neg.reshape(B, 1) if neg.ndim == 1 else neg
    N = neg_2d.shape[1]

    # Keep bf16/f16/f32 neg as-is (bytes/elem win); everything else -> f32.
    if neg_2d.dtype not in (jnp.dtype(jnp.bfloat16), jnp.dtype(jnp.float16),
                            jnp.dtype(jnp.float32)):
        neg_2d = neg_2d.astype(jnp.float32)
    itemsize = neg_2d.dtype.itemsize

    # Fold pos & popularity into a single per-row column (tiny (B,) elementwise in
    # the wrapper; drops one column BlockSpec / DMA and the per-tile recompute).
    row_term = (jnp.float32(base_margin) - pos.astype(jnp.float32)
                + jnp.float32(popularity_factor) * (1.0 - pop.astype(jnp.float32)))
    row_term = row_term.reshape(B, 1)

    # Generation-aware tile caps (all fit the per-generation scoped-VMEM default
    # with double buffering; no vmem_limit override required).
    gen = _tpu_generation()
    if tile_n_max is None:
        if gen >= 7:
            tile_n_max = 4096 if itemsize >= 4 else 8192
        else:
            tile_n_max = 2048 if itemsize >= 4 else 4096
    if tile_b_max is None:
        tile_b_max = 512

    # On v7x make sure the 'parallel' B axis has >= 2 tiles so both TCs get work.
    min_b_tiles = 2 if (gen >= 7 and B >= 16) else 1

    tile_b = _balanced_tile(B, int(tile_b_max), 8, min_tiles=min_b_tiles)
    tile_n = _balanced_tile(N, int(tile_n_max), 128)
    nb = _cdiv(B, tile_b)
    nn = _cdiv(N, tile_n)

    mask_rows = (B % tile_b) != 0
    mask_cols = (N % tile_n) != 0

    kernel = functools.partial(
        _adaptive_margin_loss_kernel,
        tile_b=tile_b, tile_n=tile_n,
        true_b=B, true_n=N,
        mask_rows=mask_rows, mask_cols=mask_cols,
    )

    cost = pl.CostEstimate(
        flops=5 * B * N,
        transcendentals=2 * B * N,
        bytes_accessed=B * N * itemsize + 2 * B * 4,
    )

    row_sums = pl.pallas_call(
        kernel,
        out_shape=jax.ShapeDtypeStruct((B, 1), jnp.float32),
        grid=(nb, nn),
        in_specs=[
            # Per-row term column: depends only on the B index -> stays resident
            # in VMEM across the inner N loop.
            pl.BlockSpec((tile_b, 1), lambda i, j: (i, 0)),
            pl.BlockSpec((tile_b, tile_n), lambda i, j: (i, j)),
        ],
        # Per-B-tile accumulator: same out block for every j -> P3 accumulator pattern.
        out_specs=pl.BlockSpec((tile_b, 1), lambda i, j: (i, 0)),
        compiler_params=pltpu.CompilerParams(
            dimension_semantics=("parallel", "arbitrary"),
        ),
        cost_estimate=cost,
    )(row_term, neg_2d)

    loss_sum = jnp.sum(row_sums)   # masked edge rows/cols contribute exactly 0

    if reduction == "sum":
        return loss_sum
    elif reduction == "mean":
        return loss_sum / jnp.float32(B * N)
    else:
        # TODO(synk): 'none' reduction needs the full (B, N) loss matrix as kernel output.
        raise ValueError(f"Unsupported reduction: {reduction}")


def _reference(pos, neg, pop, base_margin=0.5, popularity_factor=0.1):
    pos = jnp.asarray(pos, jnp.float32)
    neg = jnp.asarray(neg, jnp.float32)
    pop = jnp.asarray(pop, jnp.float32)
    margin = base_margin + popularity_factor * (1.0 - pop)
    if neg.ndim > pos.ndim:
        pos = pos[:, None]
        margin = margin[:, None]
    diff = pos - neg - margin
    return jnp.mean(jax.nn.softplus(-diff))


if __name__ == "__main__":
    key = jax.random.PRNGKey(0)
    keys = jax.random.split(key, 12)

    # Case 1: small 2-D case (B=8 users, N=8 negatives) -> single tile, col mask only.
    B, N = 8, 8
    pos_scores = jax.random.normal(keys[0], (B,), dtype=jnp.float32)
    neg_scores = jax.random.normal(keys[1], (B, N), dtype=jnp.float32)
    pos_pop = jax.random.uniform(keys[2], (B,), dtype=jnp.float32)
    out = jax.block_until_ready(adaptive_margin_loss(pos_scores, neg_scores, pos_pop))
    ref = _reference(pos_scores, neg_scores, pos_pop)
    assert jnp.allclose(out, ref, rtol=1e-5, atol=1e-6), (out, ref)

    # Case 2: unaligned shapes with tiny tile caps -> 3x3 grid with ragged edge tiles
    # masked in-kernel (no wrapper-side padding of neg).
    B2, N2 = 21, 300
    pos2 = jax.random.normal(keys[3], (B2,), dtype=jnp.float32)
    neg2 = jax.random.normal(keys[4], (B2, N2), dtype=jnp.float32)
    pop2 = jax.random.uniform(keys[5], (B2,), dtype=jnp.float32)
    out2 = jax.block_until_ready(
        adaptive_margin_loss(pos2, neg2, pop2, tile_b_max=8, tile_n_max=128))
    ref2 = _reference(pos2, neg2, pop2)
    assert jnp.allclose(out2, ref2, rtol=1e-5, atol=1e-6), (out2, ref2)

    # Case 3: 1-D negative scores (single negative per row), 'sum' reduction.
    B3 = 6
    pos3 = jax.random.normal(keys[6], (B3,), dtype=jnp.float32)
    neg3 = jax.random.normal(keys[7], (B3,), dtype=jnp.float32)
    pop3 = jax.random.uniform(keys[8], (B3,), dtype=jnp.float32)
    out3 = jax.block_until_ready(
        adaptive_margin_loss(pos3, neg3, pop3, reduction="sum"))
    ref3 = _reference(pos3, neg3, pop3) * B3
    assert jnp.allclose(out3, ref3, rtol=1e-5, atol=1e-6), (out3, ref3)

    # Case 4: bf16 negatives (HBM-bandwidth path); softplus/accumulation stay f32.
    B4, N4 = 16, 200
    pos4 = jax.random.normal(keys[9], (B4,), dtype=jnp.float32)
    neg4 = jax.random.normal(keys[10], (B4, N4), dtype=jnp.float32).astype(jnp.bfloat16)
    pop4 = jax.random.uniform(keys[11], (B4,), dtype=jnp.float32)
    out4 = jax.block_until_ready(adaptive_margin_loss(pos4, neg4, pop4))
    ref4 = _reference(pos4, neg4, pop4)
    assert jnp.allclose(out4, ref4, rtol=1e-5, atol=1e-6), (out4, ref4)

    print("KERNEL_OK")
</pallas_src>

<mosaic_0001>
module attributes {stable_mosaic.version = 11 : i64} {
  func.func @_adaptive_margin_loss_kernel(%arg0: i32, %arg1: i32, %arg2: memref<8x1xf32, #tpu.memory_space<vmem>>, %arg3: memref<8x128xf32, #tpu.memory_space<vmem>>, %arg4: memref<8x1xf32, #tpu.memory_space<vmem>>) attributes {dimension_semantics = [#tpu.dimension_semantics<parallel>, #tpu.dimension_semantics<arbitrary>], iteration_bounds = array<i64: 1, 1>, scalar_prefetch = 0 : i64, scratch_operands = 0 : i64, tpu.core_type = #tpu.core_type<tc>, window_params = [{transform_indices = @transform_0, window_bounds = array<i64: 8, 1>}, {transform_indices = @transform_1, window_bounds = array<i64: 8, 128>}, {transform_indices = @transform_2, window_bounds = array<i64: 8, 1>}]} {
    %c0_i32 = arith.constant 0 : i32
    %0 = arith.cmpi eq, %arg1, %c0_i32 : i32
    %1 = arith.extui %0 : i1 to i32
    %c0_i32_0 = arith.constant 0 : i32
    %2 = arith.cmpi ne, %1, %c0_i32_0 : i32
    scf.if %2 {
      %cst_11 = arith.constant 0.000000e+00 : f32
      %30 = vector.broadcast %cst_11 : f32 to vector<8x1xf32>
      %c0_12 = arith.constant 0 : index
      %c0_13 = arith.constant 0 : index
      %31 = vector.load %arg4[%c0_12, %c0_13] : memref<8x1xf32, #tpu.memory_space<vmem>>, vector<8x1xf32>
      tpu.vector_store %arg4[%c0_12, %c0_13], %30 {strides = array<i32>} : memref<8x1xf32, #tpu.memory_space<vmem>>, vector<8x1xf32>,
    } else {
    }
    %c0 = arith.constant 0 : index
    %c0_1 = arith.constant 0 : index
    %3 = vector.load %arg3[%c0, %c0_1] : memref<8x128xf32, #tpu.memory_space<vmem>>, vector<8x128xf32>
    %c0_2 = arith.constant 0 : index
    %c0_3 = arith.constant 0 : index
    %4 = vector.load %arg2[%c0_2, %c0_3] : memref<8x1xf32, #tpu.memory_space<vmem>>, vector<8x1xf32>
    %5 = vector.broadcast %4 : vector<8x1xf32> to vector<8x128xf32>
    %6 = arith.addf %3, %5 : vector<8x128xf32>
    %cst = arith.constant 0.000000e+00 : f32
    %7 = vector.broadcast %cst : f32 to vector<8x128xf32>
    %8 = arith.maximumf %6, %7 : vector<8x128xf32>
    %9 = math.absf %6 : vector<8x128xf32>
    %cst_4 = arith.constant 0.000000e+00 : f32
    %10 = vector.broadcast %cst_4 : f32 to vector<8x128xf32>
    %11 = arith.subf %10, %9 : vector<8x128xf32>
    %12 = math.exp %11 : vector<8x128xf32>
    %13 = math.log1p %12 : vector<8x128xf32>
    %14 = arith.addf %8, %13 : vector<8x128xf32>
    %15 = tpu.iota {dimensions = array<i32: 1>} : vector<1x128xi32>
    %c128_i32 = arith.constant 128 : i32
    %16 = arith.muli %arg1, %c128_i32 : i32
    %17 = vector.broadcast %16 : i32 to vector<1x128xi32>
    %18 = arith.addi %15, %17 : vector<1x128xi32>
    %c8_i32 = arith.constant 8 : i32
    %19 = vector.broadcast %c8_i32 : i32 to vector<1x128xi32>
    %20 = arith.cmpi slt, %18, %19 : vector<1x128xi32>
    %cst_5 = arith.constant 0.000000e+00 : f32
    %21 = vector.shape_cast %20 : vector<1x128xi1> to vector<1x128xi1>
    %22 = vector.broadcast %21 : vector<1x128xi1> to vector<8x128xi1>
    %23 = vector.broadcast %cst_5 : f32 to vector<8x128xf32>
    %24 = arith.select %22, %14, %23 : vector<8x128xi1>, vector<8x128xf32>
    %c0_6 = arith.constant 0 : index
    %c0_7 = arith.constant 0 : index
    %25 = vector.load %arg4[%c0_6, %c0_7] : memref<8x1xf32, #tpu.memory_space<vmem>>, vector<8x1xf32>
    %cst_8 = arith.constant dense<0.000000e+00> : vector<8xf32>
    %26 = vector.multi_reduction <add>, %24, %cst_8 [1] : vector<8x128xf32> to vector<8xf32>
    %27 = vector.shape_cast %26 : vector<8xf32> to vector<8x1xf32>
    %28 = arith.addf %25, %27 : vector<8x1xf32>
    %c0_9 = arith.constant 0 : index
    %c0_10 = arith.constant 0 : index
    %29 = vector.load %arg4[%c0_9, %c0_10] : memref<8x1xf32, #tpu.memory_space<vmem>>, vector<8x1xf32>
    tpu.vector_store %arg4[%c0_9, %c0_10], %28 {strides = array<i32>} : memref<8x1xf32, #tpu.memory_space<vmem>>, vector<8x1xf32>,
    return
  }
  func.func @transform_0(%arg0: i32, %arg1: i32) -> (i32, i32) {
    %c0_i32 = arith.constant 0 : i32
    %c0_i32_0 = arith.constant 0 : i32
    return %arg0, %c0_i32 : i32, i32
  }
  func.func @transform_1(%arg0: i32, %arg1: i32) -> (i32, i32) {
    %c0_i32 = arith.constant 0 : i32
    return %arg0, %arg1 : i32, i32
  }
  func.func @transform_2(%arg0: i32, %arg1: i32) -> (i32, i32) {
    %c0_i32 = arith.constant 0 : i32
    %c0_i32_0 = arith.constant 0 : i32
    return %arg0, %c0_i32 : i32, i32
  }
}

</mosaic_0001>

<bundles_post_ra>
// kernel: tpu_custom_call.1
= control target key start
LH: loop header
LB: loop body
LE: loop exit
PB: predicated region body
PF: predicated region fallthrough
CT: control target
= control target key end

     0   :  { %v66_v0 = vmov 0   ;;  %vm15_vm0 = vcmask 7168   ;;  %v67_v4 = vmov 0.0   ;;  %v40_v12 = vlaneseq  ;;  %s100_s0 = inlined_call_operand.vmem [shape: f32[8,1], index: 0, kind: input, shape index: {}]   ;;  %s101_s1 = inlined_call_operand.vmem [shape: f32[8,8], index: 1, kind: input, shape index: {}]   ;;  %s102_s2 = inlined_call_operand.vmem [shape: f32[8,1], index: 2, kind: output, shape index: {}]  }
   0x1   :  { %61 = vset.pattern.permute.xlu0 %v66_v0  ;;  %v18_v1 = vld [vmem:[%s100_s0] sm:$0xff]  ;;  %16 = vst.msk [vmem:[%s102_s2] sm:$0xff] %vm15_vm0, %v67_v4 }
   0x2   :  { %21 = vperm.xlu0 %61, %v18_v1   ;;  %v17_v2 = vld [vmem:[%s101_s1] sm:$0xff]  ;;  %v41_v15 = vand.u32 127, %v40_v12 }
   0x4   :  { %vm45_vm2 = vcmp.lt.s32.totalorder %v41_v15, 8 }
   0x8   :  { %v49_v23 = vld [vmem:[%s102_s2] sm:$0xff] }
  0x74   :  { %v22_v3 = vpop.permute.xlu0 %21 }
  0x75   :  { %v24_v5 = vadd.f32 %v22_v3, %v17_v2 }
  0x77   :  { %v26_v6 = vand.u32 2147483647, %v24_v5  ;;  %v25_v19 = vmax.f32 %v24_v5, 0.0 }
  0x79   :  { %v27_v7 = vsub.f32 0.0, %v26_v6 }
  0x7b   :  { %v28_v8 = vmul.f32 1.442695, %v27_v7 }
  0x7d   :  { %62 = vpow2.f32 %v28_v8 }
  0x83   :  { %v63_v9 = vpop.eup %62 }
  0x84   :  { %v30_v10 = vadd.f32 1.0, %v63_v9  ;;  %v33_v11 = vmul.f32 -0.5, %v63_v9  ;;  %v36_v14 = vand.u32 2147483647, %v63_v9 }
  0x86   :  { %64 = vlog2.f32 %v30_v10  ;;  %v34_v13 = vadd.f32 1.0, %v33_v11  ;;  %vm37_vm1 = vcmp.lt.f32.partialorder %v36_v14, 0.0004427343 }
  0x88   :  { %v35_v18 = vmul.f32 %v63_v9, %v34_v13 }
  0x8c   :  { %v65_v16 = vpop.eup %64 }
  0x8d   :  { %v32_v17 = vmul.f32 0.6931472, %v65_v16 }
  0x8f   :  { %v38_v20 = vsel %vm37_vm1, %v35_v18, %v32_v17 }
  0x90   :  { %v39_v21 = vadd.f32 %v38_v20, %v25_v19 }
  0x92   :  { %v48_v22 = vsel %vm45_vm2, %v39_v21, 0.0 }
  0x93   :  { %50 = vadd.xlane.f32.xlu0 %v48_v22 }
 0x106   :  { %v51_v24 = vpop.xlane.xlu0 %50 }
 0x107   :  { %v52_v25 = vadd.f32 %v51_v24, %v49_v23 }
 0x109   :  { %54 = vst.msk [vmem:[%s102_s2] sm:$0xff] %vm15_vm0, %v52_v25 }

</bundles_post_ra>
